<compile_context>
chip_gen: v6e
topology: v6e:2x2x1
jax: 0.10.0
libtpu: 0.0.40
codegen_flags: <defaults>
</compile_context>

<pallas_src>
import functools

import jax
import jax.numpy as jnp
from jax.experimental import pallas as pl
from jax.experimental.pallas import tpu as pltpu


def _linear_relu_kernel(x_ref, w_ref, b_ref, o_ref):
    # (Bt, F) @ (F, D) on the MXU with f32 accumulate; bias add + ReLU on the VPU.
    acc = jnp.dot(x_ref[...], w_ref[...], preferred_element_type=jnp.float32)
    o_ref[...] = jnp.maximum(acc + b_ref[...], 0.0).astype(o_ref.dtype)


@functools.partial(jax.jit, static_argnames=("block_b",))
def language_mlp3_forward(lang_vector, weight_t, bias, *, block_b=2048):
    """ReLU(lang_vector @ weight_t + bias).

    lang_vector: (B, F) f32
    weight_t:    (F, D) f32   (transposed vs. the torch (D, F) layout)
    bias:        (D,)   f32
    block_b:     batch tile for the large-batch path (also the small-path cutoff)
    """
    B, F = lang_vector.shape
    F2, D = weight_t.shape
    assert F == F2
    b2 = bias.reshape(1, D)

    if B <= block_b:
        # --- Small-batch path: grid-less call, everything resident in VMEM. ---
        return pl.pallas_call(
            _linear_relu_kernel,
            out_shape=jax.ShapeDtypeStruct((B, D), jnp.float32),
            in_specs=[
                pl.BlockSpec(memory_space=pltpu.MemorySpace.VMEM),
                pl.BlockSpec(memory_space=pltpu.MemorySpace.VMEM),
                pl.BlockSpec(memory_space=pltpu.MemorySpace.VMEM),
            ],
            out_specs=pl.BlockSpec(memory_space=pltpu.MemorySpace.VMEM),
        )(lang_vector, weight_t, b2)

    # --- Large-batch path: tile only B (ragged last block, no padding). ---
    tm = block_b
    return pl.pallas_call(
        _linear_relu_kernel,
        out_shape=jax.ShapeDtypeStruct((B, D), jnp.float32),
        grid=(pl.cdiv(B, tm),),
        in_specs=[
            pl.BlockSpec((tm, F), lambda i: (i, 0)),
            pl.BlockSpec((F, D), lambda i: (0, 0)),   # resident across grid
            pl.BlockSpec((1, D), lambda i: (0, 0)),   # resident across grid
        ],
        out_specs=pl.BlockSpec((tm, D), lambda i: (i, 0)),
        compiler_params=pltpu.CompilerParams(
            dimension_semantics=("parallel",),  # lets v7x shard B across both TCs
        ),
    )(lang_vector, weight_t, b2)


if __name__ == "__main__":
    # Module hyperparameters (small, consistent with the forward pass).
    batch = 8
    num_language_features = 32
    low_rank_dim = 16
    # nl_project / language_emb_dropout are unused in forward.

    key = jax.random.PRNGKey(0)
    kx, kw, kb, kx2 = jax.random.split(key, 4)

    # nn.Linear-style init: U(-1/sqrt(fan_in), +1/sqrt(fan_in)).
    bound = 1.0 / (num_language_features ** 0.5)
    # torch weight is (D, F); store transposed as (F, D) for x @ W.
    weight_t = jax.random.uniform(
        kw, (num_language_features, low_rank_dim), jnp.float32, -bound, bound
    )
    bias = jax.random.uniform(kb, (low_rank_dim,), jnp.float32, -bound, bound)

    # --- Small-batch (grid-less) path ---
    lang_vector = jax.random.normal(kx, (batch, num_language_features), jnp.float32)
    out = language_mlp3_forward(lang_vector, weight_t, bias)
    jax.block_until_ready(out)

    ref = jnp.maximum(lang_vector @ weight_t + bias, 0.0)
    assert out.shape == (batch, low_rank_dim)
    assert jnp.allclose(out, ref, atol=1e-5, rtol=1e-5)

    # --- Large-batch (tiled, "parallel", ragged-safe) path ---
    big_batch = 8192 + 100  # exercises the ragged last block
    lang_big = jax.random.normal(kx2, (big_batch, num_language_features), jnp.float32)
    out_big = language_mlp3_forward(lang_big, weight_t, bias, block_b=2048)
    jax.block_until_ready(out_big)

    ref_big = jnp.maximum(lang_big @ weight_t + bias, 0.0)
    assert out_big.shape == (big_batch, low_rank_dim)
    assert jnp.allclose(out_big, ref_big, atol=1e-5, rtol=1e-5)

    # TODO(synk): .clone().detach().requires_grad_(True).to('cuda:0') is
    # autograd/device plumbing with no Pallas equivalent; dropout is unused in forward.
    print("KERNEL_OK")
</pallas_src>

<mosaic_0001>
module attributes {stable_mosaic.version = 11 : i64} {
  func.func @_linear_relu_kernel(%arg0: memref<8x32xf32, #tpu.memory_space<vmem>>, %arg1: memref<32x16xf32, #tpu.memory_space<vmem>>, %arg2: memref<1x16xf32, #tpu.memory_space<vmem>>, %arg3: memref<8x16xf32, #tpu.memory_space<vmem>>) attributes {dimension_semantics = [], scalar_prefetch = 0 : i64, scratch_operands = 0 : i64, tpu.core_type = #tpu.core_type<tc>} {
    %c0 = arith.constant 0 : index
    %c0_0 = arith.constant 0 : index
    %0 = vector.load %arg0[%c0, %c0_0] : memref<8x32xf32, #tpu.memory_space<vmem>>, vector<8x32xf32>
    %c0_1 = arith.constant 0 : index
    %c0_2 = arith.constant 0 : index
    %1 = vector.load %arg1[%c0_1, %c0_2] : memref<32x16xf32, #tpu.memory_space<vmem>>, vector<32x16xf32>
    %cst = arith.constant dense<0.000000e+00> : vector<8x16xf32>
    %2 = tpu.matmul %0, %1, %cst {dimension_numbers = #tpu.dot_dimension_numbers<[1], [0], [0], [1], [0, 0, 1, 1], [], []>} : vector<8x32xf32>, vector<32x16xf32>, vector<8x16xf32> -> vector<8x16xf32>
    %c0_3 = arith.constant 0 : index
    %c0_4 = arith.constant 0 : index
    %3 = vector.load %arg2[%c0_3, %c0_4] : memref<1x16xf32, #tpu.memory_space<vmem>>, vector<1x16xf32>
    %4 = vector.broadcast %3 : vector<1x16xf32> to vector<8x16xf32>
    %5 = arith.addf %2, %4 : vector<8x16xf32>
    %cst_5 = arith.constant 0.000000e+00 : f32
    %6 = vector.broadcast %cst_5 : f32 to vector<8x16xf32>
    %7 = arith.maximumf %5, %6 : vector<8x16xf32>
    %c0_6 = arith.constant 0 : index
    %c0_7 = arith.constant 0 : index
    %8 = vector.load %arg3[%c0_6, %c0_7] : memref<8x16xf32, #tpu.memory_space<vmem>>, vector<8x16xf32>
    tpu.vector_store %arg3[%c0_6, %c0_7], %7 {strides = array<i32>} : memref<8x16xf32, #tpu.memory_space<vmem>>, vector<8x16xf32>,
    return
  }
}

</mosaic_0001>

<bundles_post_ra>
// kernel: language_mlp3_forward.1
= control target key start
LH: loop header
LB: loop body
LE: loop exit
PB: predicated region body
PF: predicated region fallthrough
CT: control target
= control target key end

     0   :  { %v161_v1 = vmov 0.0   ;;  %vm162_vm0 = vmmov 0   ;;  %s205_s0 = inlined_call_operand.vmem [shape: f32[8,32], index: 0, kind: input, shape index: {}]   ;;  %s206_s1 = inlined_call_operand.vmem [shape: f32[32,16], index: 1, kind: input, shape index: {}]   ;;  %s207_s2 = inlined_call_operand.vmem [shape: f32[1,16], index: 2, kind: input, shape index: {}]   ;;  %s208_s3 = inlined_call_operand.hbm [shape: f32[8,16], index: 3, kind: output, shape index: {}]  }
   0x1   :  { %v19_v0 = vld [vmem:[%s206_s1 + $0x18] sm:$0xff]  ;;  %125 = vmatprep.subr.mxu0 %v161_v1  ;;  %v18_v2 = vld [vmem:[%s206_s1 + $0x10] sm:$0xff]  ;;  %133 = vmatprep.mubr.msk.f32.mxu0 %vm162_vm0, %v161_v1 }
   0x2   :  { %126 = vmatpush3.msra.mxu0 %v19_v0 }
   0x3   :  { %8 = vsyncpa [#allocation3], 0  ;;  %127 = vmatprep.subr.mxu0 %v161_v1  ;;  %v17_v3 = vld [vmem:[%s206_s1 + $0x8] sm:$0xff]  ;;  %v16_v4 = vld [vmem:[%s206_s1] sm:$0xff]  ;;  %vm27_vm1 = vcmask 261120   ;;  %s163_s24 = smov [#allocation2]  }
   0x4   :  { %128 = vmatpush3.msra.mxu0 %v18_v2  ;;  %v15_v5 = vld [vmem:[%s205_s0] sm:$0xff]  ;;  %s110_s25 = sshll.u32 %s163_s24, 4  ;;  %vm102_vm2 = vcmask 130048   ;;  %s111_s25 = int_to_ptr.vmem [resolvable:$true] %s110_s25 }
   0x5   :  { %129 = vmatprep.subr.mxu0 %v161_v1  ;;  %v118_v6 = vld [vmem:[%s207_s2] ss:$0 sm:$0xff]  ;;  %s139_s1 = scalar_lea.vmem %s111_s25, 128  ;;  %p144_p1 = scmp.lt.s32.totalorder %s111_s25, %s111_s25 }
   0x6   :  { %130 = vmatpush3.msra.mxu0 %v17_v3  ;;  %p140_p0 = scmp.ne.s32.totalorder %s111_s25, %s139_s1  ;;  %p145_p2 = scmp.lt.s32.totalorder %s139_s1, %s139_s1 }
   0x7   :  { %131 = vmatprep.subr.mxu0 %v161_v1 }
   0x8   :  { %132 = vmatpush3.msra.mxu0 %v16_v4  ;;  %p146_p3 = por %p145_p2, %p144_p1 }
   0x9   :  { %134 = vmatmul.mubr.msk.f32.vlgmr.msra.gmra.mxu0 %vm27_vm1, %v15_v5 }
   0xa   :  { %p147_p4 = pnand %p146_p3, %p140_p0 }
  0xc9   :  { %v97_v7 = vpop.f32.mrf.mxu0 }
  0xca   :  { %v98_v8 = vadd.f32 %v118_v6, %v97_v7 }
  0xcb   :  { %v135_v9 = vpop.f32.mrf.mxu0 }
  0xcc   :  { %v101_v10 = vmax.f32 %v98_v8, 0.0 }
  0xce   :  { %103 = vst.msk [vmem:[#allocation2] sm:$0xff] %vm102_vm2, %v101_v10 }
  0xcf   :  { %150 = shalt.err (!%p147_p4)
}
  0xd0   :  { %113 = dma.vmem_to_hbm [thread:$0]  %s111_s25, 128, %s208_s3, [#allocation3]  }
  0xd1   :  { %159 = dma.done.wait [#allocation3], 128  }
  0xd2   :  { %160 = vsyncadd [#allocation3], 4294967168 }
  0xd3   :  { %117 = vsyncpa [#allocation3], 1 }

</bundles_post_ra>
